<compile_context>
chip_gen: v5e
topology: v5e:2x2
jax: 0.10.0
libtpu: 0.0.40
codegen_flags: <defaults>
</compile_context>

<pallas_src>
import functools

import jax
import jax.numpy as jnp
from jax.experimental import pallas as pl
from jax.experimental.pallas import tpu as pltpu

_LANE = 128          # vreg lane width
_SUBLANE_BF16 = 16   # bf16 rows per packed vreg sublane group


def _cdiv(a: int, b: int) -> int:
    return (a + b - 1) // b


def _round_up(v: int, m: int) -> int:
    return _cdiv(v, m) * m


def _linear_kernel(x_ref, w_ref, b_ref, o_ref, *, compute_dtype):
    # x_ref: (TB, H) input dtype | w_ref: (H, TC) compute_dtype
    # b_ref: (1, TC) f32         | o_ref: (TB, TC) out_dtype
    x = x_ref[...].astype(compute_dtype)            # in-kernel cast: no HBM pre-pass
    acc = jnp.dot(x, w_ref[...], preferred_element_type=jnp.float32)
    o_ref[...] = (acc + b_ref[...]).astype(o_ref.dtype)   # in-kernel cast: no epilogue


def prepare_classifier_params(weight, bias, compute_dtype=jnp.bfloat16):
    """One-time parameter prep (call once, OUTSIDE the per-step forward).

    weight: (C, H)  PyTorch nn.Linear layout.
    Returns:
      w_t : (H, Cp) compute_dtype  -- transposed, lane-padded (Cp = round_up(C, 128))
      b2  : (1, Cp) float32        -- zero-padded bias (padding columns exactly 0)
    """
    C, H = weight.shape
    Cp = _round_up(C, _LANE)
    w_t = jnp.zeros((H, Cp), compute_dtype).at[:, :C].set(weight.T.astype(compute_dtype))
    b2 = jnp.zeros((1, Cp), jnp.float32).at[:, :C].set(bias.astype(jnp.float32))
    return w_t, b2


def classifier_forward(x, w_t, b2, num_classes, *, block_b=1024, block_c=2048,
                       compute_dtype=jnp.bfloat16, out_dtype=None):
    """Pallas path: out = x @ W^T + b with a (class, batch) tiled grid.

    x   : (B, H)
    w_t : (H, Cp)  from prepare_classifier_params
    b2  : (1, Cp)  from prepare_classifier_params
    """
    B, H = x.shape
    Hw, Cp = w_t.shape
    assert Hw == H, f"weight hidden dim {Hw} != input hidden dim {H}"
    out_dtype = jnp.dtype(out_dtype if out_dtype is not None else x.dtype)

    # ---- class tiling: largest multiple of 128 that divides Cp and is <= block_c
    #      (exact divisor -> no extra per-call padding of the prepared weight).
    m = Cp // _LANE
    max_t = max(1, block_c // _LANE)
    t = 1
    for cand in range(min(m, max_t), 0, -1):
        if m % cand == 0:
            t = cand
            break
    TC = t * _LANE
    n_c = Cp // TC

    # ---- batch tiling: balanced tiles (minimal pad waste), 16-row aligned,
    #      and >=2 total grid steps when possible so v7x's two TCs both work.
    n_b = max(1, _cdiv(B, block_b))
    if n_c * n_b < 2 and B > _SUBLANE_BF16:
        n_b = 2
    TB = _round_up(_cdiv(B, n_b), _SUBLANE_BF16)
    n_b = _cdiv(B, TB)
    Bp = n_b * TB

    xk = x if Bp == B else jnp.pad(x, ((0, Bp - B), (0, 0)))

    # ---- VMEM budget (account for actual buffer counts), capped v7x-safe.
    cbytes = jnp.dtype(compute_dtype).itemsize
    xbytes = jnp.dtype(x.dtype).itemsize
    obytes = out_dtype.itemsize
    w_bufs = 1 if n_c == 1 else 2       # Buffered(1) when the weight is resident
    tile_vmem = (2 * TB * H * xbytes                      # double-buffered x tiles
                 + w_bufs * (H * TC * cbytes + TC * 4)    # weight + bias buffers
                 + 2 * TB * TC * obytes)                  # double-buffered out tiles
    vmem_limit = int(min(max(2 * tile_vmem, 8 * 1024 * 1024), 48 * 1024 * 1024))

    cost = pl.CostEstimate(
        flops=2 * Bp * H * Cp,
        transcendentals=0,
        bytes_accessed=(n_c * Bp * H * xbytes      # x re-read once per class tile
                        + H * Cp * cbytes          # weight read once (class axis outer)
                        + Cp * 4                   # bias
                        + Bp * Cp * obytes),       # output writeback
    )

    x_spec = pl.BlockSpec((TB, H), lambda j, i: (i, 0))
    if n_c == 1:
        # Constant index_map -> resident weight/bias; single-buffer to halve VMEM.
        w_spec = pl.BlockSpec((H, TC), lambda j, i: (0, j), pipeline_mode=pl.Buffered(1))
        b_spec = pl.BlockSpec((1, TC), lambda j, i: (0, j), pipeline_mode=pl.Buffered(1))
    else:
        w_spec = pl.BlockSpec((H, TC), lambda j, i: (0, j))
        b_spec = pl.BlockSpec((1, TC), lambda j, i: (0, j))
    o_spec = pl.BlockSpec((TB, TC), lambda j, i: (i, j))

    out_padded = pl.pallas_call(
        functools.partial(_linear_kernel, compute_dtype=compute_dtype),
        out_shape=jax.ShapeDtypeStruct((Bp, Cp), out_dtype),
        grid_spec=pltpu.PrefetchScalarGridSpec(
            num_scalar_prefetch=0,
            grid=(n_c, n_b),                 # class tiles outer, batch tiles inner
            in_specs=[x_spec, w_spec, b_spec],
            out_specs=o_spec,
        ),
        compiler_params=pltpu.CompilerParams(
            dimension_semantics=("parallel", "parallel"),
            vmem_limit_bytes=vmem_limit,
        ),
        cost_estimate=cost,
    )(xk, w_t, b2)

    if Bp == B and Cp == num_classes:
        return out_padded
    return out_padded[:B, :num_classes]     # strip pad only; dtype already correct


def make_classifier(weight, bias, *, compute_dtype=jnp.bfloat16,
                    use_pallas=None, **fwd_kw):
    """Build the forward closure for fd_shifts `Classifier(nn.Linear(H, C))`.

    Parameters are transposed / cast / lane-padded exactly once here (never
    per forward call).  use_pallas=None -> auto: tiny heads use plain XLA
    (better fusion into the surrounding graph), large heads use the Pallas
    kernel.
    """
    num_classes, hidden = weight.shape
    if use_pallas is None:
        use_pallas = hidden * num_classes >= (1 << 18)

    if not use_pallas:
        w_ref, b_ref = weight, bias

        def forward(x):
            return x @ w_ref.T + b_ref
        return forward

    w_t, b2 = prepare_classifier_params(weight, bias, compute_dtype)

    def forward(x):
        return classifier_forward(x, w_t, b2, num_classes,
                                  compute_dtype=compute_dtype, **fwd_kw)
    return forward


if __name__ == "__main__":
    # TODO(synk): `Classifier` only forwards to its inner module; the inner
    # module is assumed to be the ViT head nn.Linear(hidden, num_classes).

    # --- Test 1: small ViT-head shapes, single-tile path (forced Pallas). ---
    batch, hidden, num_classes = 8, 32, 16
    key = jax.random.PRNGKey(0)
    kx, kw_, kb, kx2, kw2, kb2 = jax.random.split(key, 6)

    x = jax.random.normal(kx, (batch, hidden), dtype=jnp.float32)
    weight = jax.random.normal(kw_, (num_classes, hidden), dtype=jnp.float32) * 0.02
    bias = jax.random.normal(kb, (num_classes,), dtype=jnp.float32) * 0.01
    ref = x @ weight.T + bias

    fwd = make_classifier(weight, bias, use_pallas=True)
    out = jax.block_until_ready(fwd(x))
    assert out.shape == (batch, num_classes)
    assert out.dtype == x.dtype
    # bf16 MXU inputs with f32 accumulation -> loose tolerance vs. f32 reference.
    assert jnp.allclose(out, ref, atol=2e-2, rtol=2e-2), float(jnp.max(jnp.abs(out - ref)))

    # --- Test 2: exercise the 2-D (class x batch) tiled path with small tiles.
    B2, H2, C2 = 40, 64, 300
    x2 = jax.random.normal(kx2, (B2, H2), dtype=jnp.float32)
    w2 = jax.random.normal(kw2, (C2, H2), dtype=jnp.float32) * 0.02
    bb2 = jax.random.normal(kb2, (C2,), dtype=jnp.float32) * 0.01
    ref2 = x2 @ w2.T + bb2

    fwd2 = make_classifier(w2, bb2, use_pallas=True, block_b=16, block_c=128)
    out2 = jax.block_until_ready(fwd2(x2))
    assert out2.shape == (B2, C2)
    assert jnp.allclose(out2, ref2, atol=2e-2, rtol=2e-2), float(jnp.max(jnp.abs(out2 - ref2)))

    # --- Test 3: auto dispatch at tiny size takes the plain-XLA path (exact f32).
    fwd_auto = make_classifier(weight, bias)
    out_auto = jax.block_until_ready(fwd_auto(x))
    assert jnp.allclose(out_auto, ref, atol=1e-5, rtol=1e-5)

    print("KERNEL_OK")
</pallas_src>

<mosaic_0001>
module attributes {stable_mosaic.version = 11 : i64} {
  func.func @_linear_kernel(%arg0: i32, %arg1: i32, %arg2: memref<16x32xf32, #tpu.memory_space<vmem>>, %arg3: memref<32x128xbf16, #tpu.memory_space<vmem>>, %arg4: memref<1x128xf32, #tpu.memory_space<vmem>>, %arg5: memref<16x128xf32, #tpu.memory_space<vmem>>) attributes {dimension_semantics = [#tpu.dimension_semantics<parallel>, #tpu.dimension_semantics<parallel>], iteration_bounds = array<i64: 1, 1>, scalar_prefetch = 0 : i64, scratch_operands = 0 : i64, tpu.core_type = #tpu.core_type<tc>, window_params = [{transform_indices = @transform_0, window_bounds = array<i64: 16, 32>}, {pipeline_mode = #tpu.pipeline_mode<synchronous>, transform_indices = @transform_1, window_bounds = array<i64: 32, 128>}, {pipeline_mode = #tpu.pipeline_mode<synchronous>, transform_indices = @transform_2, window_bounds = array<i64: 1, 128>}, {transform_indices = @transform_3, window_bounds = array<i64: 16, 128>}]} {
    %c0 = arith.constant 0 : index
    %c0_0 = arith.constant 0 : index
    %0 = vector.load %arg2[%c0, %c0_0] : memref<16x32xf32, #tpu.memory_space<vmem>>, vector<16x32xf32>
    %1 = arith.truncf %0 : vector<16x32xf32> to vector<16x32xbf16>
    %c0_1 = arith.constant 0 : index
    %c0_2 = arith.constant 0 : index
    %2 = vector.load %arg3[%c0_1, %c0_2] : memref<32x128xbf16, #tpu.memory_space<vmem>>, vector<32x128xbf16>
    %cst = arith.constant dense<0.000000e+00> : vector<16x128xf32>
    %3 = tpu.matmul %1, %2, %cst {dimension_numbers = #tpu.dot_dimension_numbers<[1], [0], [0], [1], [0, 0, 1, 1], [], []>} : vector<16x32xbf16>, vector<32x128xbf16>, vector<16x128xf32> -> vector<16x128xf32>
    %c0_3 = arith.constant 0 : index
    %c0_4 = arith.constant 0 : index
    %4 = vector.load %arg4[%c0_3, %c0_4] : memref<1x128xf32, #tpu.memory_space<vmem>>, vector<1x128xf32>
    %5 = vector.broadcast %4 : vector<1x128xf32> to vector<16x128xf32>
    %6 = arith.addf %3, %5 : vector<16x128xf32>
    %c0_5 = arith.constant 0 : index
    %c0_6 = arith.constant 0 : index
    %7 = vector.load %arg5[%c0_5, %c0_6] : memref<16x128xf32, #tpu.memory_space<vmem>>, vector<16x128xf32>
    tpu.vector_store %arg5[%c0_5, %c0_6], %6 {strides = array<i32>} : memref<16x128xf32, #tpu.memory_space<vmem>>, vector<16x128xf32>,
    return
  }
  func.func @transform_0(%arg0: i32, %arg1: i32) -> (i32, i32) {
    %c0_i32 = arith.constant 0 : i32
    %c0_i32_0 = arith.constant 0 : i32
    return %arg1, %c0_i32 : i32, i32
  }
  func.func @transform_1(%arg0: i32, %arg1: i32) -> (i32, i32) {
    %c0_i32 = arith.constant 0 : i32
    %c0_i32_0 = arith.constant 0 : i32
    return %c0_i32, %arg0 : i32, i32
  }
  func.func @transform_2(%arg0: i32, %arg1: i32) -> (i32, i32) {
    %c0_i32 = arith.constant 0 : i32
    %c0_i32_0 = arith.constant 0 : i32
    return %c0_i32, %arg0 : i32, i32
  }
  func.func @transform_3(%arg0: i32, %arg1: i32) -> (i32, i32) {
    %c0_i32 = arith.constant 0 : i32
    return %arg1, %arg0 : i32, i32
  }
}

</mosaic_0001>

<bundles_post_ra>
// kernel: tpu_custom_call.1
= control target key start
LH: loop header
LB: loop body
LE: loop exit
PB: predicated region body
PF: predicated region fallthrough
CT: control target
= control target key end

     0   :  { %8 = vsyncpa [#allocation3], 0  ;;  %s253_s0 = inlined_call_operand.hbm [shape: f32[16,32], index: 0, kind: input, shape index: {}]   ;;  %s254_s1 = inlined_call_operand.hbm [shape: bf16[32,128], index: 1, kind: input, shape index: {}]   ;;  %s255_s2 = inlined_call_operand.vmem [shape: f32[1,128], index: 2, kind: input, shape index: {}]   ;;  %s256_s3 = inlined_call_operand.hbm [shape: f32[16,128], index: 3, kind: output, shape index: {}]  }
   0x1   :  { %9 = vsyncpa [#allocation6], 0 }
   0x2   :  { %10 = vsyncpa [#allocation4], 0  ;;  %s15_s14 = sshll.u32 %s253_s0, 4  ;;  %s208_s15 = smov [#allocation2]   ;;  %s16_s14 = int_to_ptr.hbm [resolvable:$true] %s15_s14 }
   0x3   :  { %s17_s16 = sshll.u32 %s208_s15, 4  ;;  %s28_s19 = sshll.u32 %s254_s1, 4  ;;  %s18_s16 = int_to_ptr.vmem [resolvable:$true] %s17_s16  ;;  %s29_s19 = int_to_ptr.hbm [resolvable:$true] %s28_s19 }
   0x4   :  { %s209_s20 = smov 128   ;;  %s210_s21 = smov 8  }
   0x5   :  { %23 = dma.hbm_to_vmem [thread:$0]  %s16_s14, 256, %s18_s16, [#allocation3], %s209_s20, %s209_s20, %s210_s21  }
   0x6   :  { %s211_s22 = smov [#allocation5]   ;;  %s212_s24 = smov 64  }
   0x7   :  { %s30_s23 = sshll.u32 %s211_s22, 4  ;;  %s213_s0 = smov 4   ;;  %s31_s23 = int_to_ptr.vmem [resolvable:$true] %s30_s23 }
   0x8   :  { %36 = dma.hbm_to_vmem [thread:$0]  %s29_s19, 256, %s31_s23, [#allocation6], %s212_s24, %s212_s24, %s213_s0  }
   0x9   :  { %202 = dma.done.wait [#allocation3], 256  }
   0xa   :  { %203 = vsyncadd [#allocation3], 4294967040 }
   0xb   :  { %204 = dma.done.wait [#allocation6], 256  }
   0xc   :  { %205 = vsyncadd [#allocation6], 4294967040  ;;  %v121_v0 = vld [vmem:[#allocation5 + $0x8] sm:$0xff]  ;;  %v120_v1 = vld [vmem:[#allocation5] sm:$0xff]  ;;  %vm71_vm0 = vcmask 261120   ;;  %s214_s26 = smov [#allocation7]  }
   0xd   :  { %81 = vmatpush.bf16.msra.mxu0 %v121_v0  ;;  %v48_v2 = vld [vmem:[#allocation2] sm:$0xff]  ;;  %v49_v3 = vld [vmem:[#allocation2 + $0x8] sm:$0xff]  ;;  %s95_s27 = sshll.u32 %s214_s26, 4  ;;  %s97_s30 = sshll.u32 %s256_s3, 4  ;;  %s96_s27 = int_to_ptr.vmem [resolvable:$true] %s95_s27  ;;  %s98_s30 = int_to_ptr.hbm [resolvable:$true] %s97_s30 }
   0xe   :  { %v50_v4 = vpack.c.bf16 %v49_v3, %v48_v2  ;;  %v129_v5 = vld [vmem:[%s255_s2] ss:$0 sm:$0xff] }
  0x11   :  { %82 = vmatpush.bf16.msra.mxu0 %v120_v1 }
  0x14   :  { %119 = vmatmul.msk.bf16.vlgmr.msra.gmra.mxu0 %vm71_vm0, %v50_v4 }
  0x91   :  { %v84_v6 = vpop.f32.mrf.mxu0 }
  0x92   :  { %v85_v7 = vadd.f32 %v129_v5, %v84_v6 }
  0x94   :  { %89 = vst [vmem:[#allocation7] sm:$0xff] %v85_v7 }
  0x99   :  { %v86_v8 = vpop.f32.mrf.mxu0 }
  0x9a   :  { %v87_v9 = vadd.f32 %v129_v5, %v86_v8 }
  0x9c   :  { %90 = vst [vmem:[#allocation7 + $0x8] sm:$0xff] %v87_v9 }
  0x9d   :  { %103 = dma.vmem_to_hbm [thread:$0]  %s96_s27, 256, %s98_s30, [#allocation4], %s209_s20, %s209_s20, %s210_s21  }
  0x9e   :  { %206 = dma.done.wait [#allocation4], 256  }
  0x9f   :  { %207 = vsyncadd [#allocation4], 4294967040 }
  0xa0   :  { %108 = vsyncpa [#allocation3], 1 }
  0xa1   :  { %109 = vsyncpa [#allocation6], 1 }
  0xa2   :  { %110 = vsyncpa [#allocation4], 1 }

</bundles_post_ra>
